<compile_context>
chip_gen: v6e
topology: v6e:2x2x1
jax: 0.10.0
libtpu: 0.0.40
codegen_flags: <defaults>
</compile_context>

<pallas_src>
import functools

import jax
import jax.numpy as jnp
from jax.experimental import pallas as pl
from jax.experimental.pallas import tpu as pltpu


# ---------------------------------------------------------------------------
# Fused Pallas kernel
# ---------------------------------------------------------------------------
def _fused_gcn_kernel(x_ref, a_ref, wg_ref, bg_ref, wc_ref, bc_ref, out_ref,
                      acc_ref, h_ref, *, num_layer, jk, tm, nrt):
    """Fused NodeClassification forward.

    grid = (num_layer, num_row_tiles, num_k_tiles) with tk == tm.
      l : layer (sequential — hidden state carried in VMEM scratch)
      i : row tile of A / of the new embedding
      k : contraction tile (cols of A / rows of the previous embedding)

    h_ref: VMEM slot store ((num_layer+1)*nrt, tm, hidden); slot j*nrt + r holds
    rows [r*tm, (r+1)*tm) of the layer-j embedding (layer 0 == input features).
    """
    l = pl.program_id(0)
    i = pl.program_id(1)
    k = pl.program_id(2)
    nk = pl.num_programs(2)

    # One-time: stage input features into the layer-0 slots of the VMEM store.
    @pl.when((l == 0) & (i == 0) & (k == 0))
    def _():
        for r in range(nrt):
            h_ref[r] = x_ref[pl.ds(r * tm, tm), :]

    # Zero the accumulator at the start of every K reduction.
    @pl.when(k == 0)
    def _():
        acc_ref[...] = jnp.zeros_like(acc_ref)

    # acc += A[i_tile, k_tile] @ H_l[k_tile]   (bf16 x bf16 -> f32 on the MXU)
    h_prev = h_ref[l * nrt + k]
    acc_ref[...] += jnp.dot(a_ref[...], h_prev,
                            preferred_element_type=jnp.float32)

    # Layer epilogue for this row tile: H_{l+1}[i_tile] = relu(acc @ W_l + b_l)
    @pl.when(k == nk - 1)
    def _():
        z = jnp.dot(acc_ref[...].astype(jnp.bfloat16), wg_ref[...],
                    preferred_element_type=jnp.float32) + bg_ref[...]
        h_ref[(l + 1) * nrt + i] = jnp.maximum(z, 0.0).astype(h_ref.dtype)

    # Classifier fused into the last layer's epilogue (lane-dense 128-wide out).
    @pl.when((k == nk - 1) & (l == num_layer - 1))
    def _():
        srcs = list(range(num_layer + 1)) if jk == "concat" else [num_layer]
        total = None
        for w_idx, src in enumerate(srcs):
            hj = h_ref[src * nrt + i]
            contrib = jnp.dot(hj, wc_ref[w_idx],
                              preferred_element_type=jnp.float32)
            total = contrib if total is None else total + contrib
        out_ref[...] = (total + bc_ref[...]).astype(out_ref.dtype)


# ---------------------------------------------------------------------------
# Wrapper: NodeClassification.forward(data)
# ---------------------------------------------------------------------------
@functools.partial(jax.jit, static_argnames=("jk", "output_size"))
def node_classification_forward(a_hat, x, gcn_w, gcn_b, cls_w, cls_b, *,
                                jk="last", output_size):
    n, hidden = x.shape
    num_layer = gcn_w.shape[0]
    pad_out = cls_w.shape[-1]

    tm = 128 if n % 128 == 0 else n      # row tile == k tile
    assert n % tm == 0
    nrt = n // tm
    grid = (num_layer, nrt, nrt)

    # Rough VMEM budget; cap below v7x's 64 MiB physical VMEM.
    est = ((num_layer + 1) * n * hidden * 2        # hidden-state slots (bf16)
           + tm * hidden * 4                       # f32 accumulator
           + 4 * tm * tm * 2                       # double-buffered A tiles
           + 2 * n * hidden * 2                    # resident x
           + 2 * num_layer * hidden * hidden * 2   # layer weights
           + 2 * cls_w.size * 2 + 4 * tm * pad_out * 4)
    vmem_limit = int(min(max(2 * est, 32 * 2**20), 60 * 2**20))

    kernel = functools.partial(_fused_gcn_kernel, num_layer=num_layer,
                               jk=jk, tm=tm, nrt=nrt)

    out_padded = pl.pallas_call(
        kernel,
        out_shape=jax.ShapeDtypeStruct((n, pad_out), jnp.float32),
        grid_spec=pltpu.PrefetchScalarGridSpec(
            num_scalar_prefetch=0,
            grid=grid,
            in_specs=[
                pl.BlockSpec((n, hidden), lambda l, i, k: (0, 0)),      # x (resident)
                pl.BlockSpec((tm, tm), lambda l, i, k: (i, k)),         # A_hat tiles
                pl.BlockSpec((None, hidden, hidden),
                             lambda l, i, k: (l, 0, 0)),                # W_l (per layer)
                pl.BlockSpec((None, 1, hidden),
                             lambda l, i, k: (l, 0, 0)),                # b_l (per layer)
                pl.BlockSpec(cls_w.shape, lambda l, i, k: (0, 0, 0)),   # W_cls (resident)
                pl.BlockSpec((1, pad_out), lambda l, i, k: (0, 0)),     # b_cls (resident)
            ],
            out_specs=pl.BlockSpec((tm, pad_out), lambda l, i, k: (i, 0)),
            scratch_shapes=[
                pltpu.VMEM((tm, hidden), jnp.float32),                          # acc
                pltpu.VMEM(((num_layer + 1) * nrt, tm, hidden), jnp.bfloat16),  # H slots
            ],
        ),
        compiler_params=pltpu.CompilerParams(
            dimension_semantics=("arbitrary", "arbitrary", "arbitrary"),
            vmem_limit_bytes=vmem_limit,
        ),
    )(
        x.astype(jnp.bfloat16),
        a_hat.astype(jnp.bfloat16),
        gcn_w.astype(jnp.bfloat16),
        gcn_b.astype(jnp.float32),
        cls_w.astype(jnp.bfloat16),
        cls_b.astype(jnp.float32),
    )
    return out_padded[:, :output_size]


# ---------------------------------------------------------------------------
# Pure-JAX reference (mirrors the kernel's bf16 quantization) for validation
# ---------------------------------------------------------------------------
def reference_forward(a_hat, x, gcn_w, gcn_b, cls_w, cls_b, *, jk, output_size):
    bf = jnp.bfloat16
    a_bf = a_hat.astype(bf)
    h = x.astype(bf)
    hs = [h]
    for l in range(gcn_w.shape[0]):
        agg = jnp.dot(a_bf, h, preferred_element_type=jnp.float32)
        z = jnp.dot(agg.astype(bf), gcn_w[l].astype(bf),
                    preferred_element_type=jnp.float32) + gcn_b[l]
        h = jnp.maximum(z, 0.0).astype(bf)
        hs.append(h)
    feats = hs if jk == "concat" else [hs[-1]]
    out = jnp.zeros((x.shape[0], cls_w.shape[-1]), jnp.float32)
    for j, hj in enumerate(feats):
        out = out + jnp.dot(hj, cls_w[j].astype(bf),
                            preferred_element_type=jnp.float32)
    return (out + cls_b)[:, :output_size]


# ---------------------------------------------------------------------------
# Parameter / input construction (deterministic, in-script)
# ---------------------------------------------------------------------------
def make_params(key, hidden, num_layer, output_size, jk="last"):
    k_w, k_b = jax.random.split(key)
    std = (2.0 / (hidden + hidden)) ** 0.5
    gcn_w = std * jax.random.normal(k_w, (num_layer, hidden, hidden), jnp.float32)
    gcn_b = jnp.zeros((num_layer, 1, hidden), jnp.float32)

    n_slices = num_layer + 1 if jk == "concat" else 1
    cls_in = hidden * n_slices
    pad_out = ((output_size + 127) // 128) * 128
    # reset_parameters(): xavier_normal_ then zeros_ -> classifier weight is zeros.
    cls_w = jnp.zeros((n_slices, hidden, pad_out), jnp.float32)
    # Bias keeps nn.Linear default uniform(-1/sqrt(fan_in), 1/sqrt(fan_in)).
    bound = 1.0 / (cls_in ** 0.5)
    b = jax.random.uniform(k_b, (output_size,), jnp.float32, -bound, bound)
    cls_b = jnp.zeros((1, pad_out), jnp.float32).at[0, :output_size].set(b)
    return {"gcn_w": gcn_w, "gcn_b": gcn_b, "cls_w": cls_w, "cls_b": cls_b}


def make_graph(key, n_nodes, hidden):
    k_feat, k_adj = jax.random.split(key)
    x = jax.random.normal(k_feat, (n_nodes, hidden), jnp.float32)
    logits = jax.random.uniform(k_adj, (n_nodes, n_nodes))
    adj = (logits > 0.7).astype(jnp.float32)
    adj = jnp.maximum(adj, adj.T)
    adj = adj + jnp.eye(n_nodes, dtype=jnp.float32)
    deg = adj.sum(axis=1)
    d_inv_sqrt = 1.0 / jnp.sqrt(deg)
    a_hat = adj * d_inv_sqrt[:, None] * d_inv_sqrt[None, :]
    return a_hat, x


# ---------------------------------------------------------------------------
if __name__ == "__main__":
    N_NODES = 256
    HIDDEN = 128
    NUM_LAYER = 2
    OUTPUT_SIZE = 8

    key = jax.random.PRNGKey(0)
    k_params, k_graph, k_cls = jax.random.split(key, 3)
    a_hat, x = make_graph(k_graph, N_NODES, HIDDEN)

    # Module-faithful forward (classifier weight zeroed by reset_parameters()),
    # for both JK modes: output rows must equal the classifier bias exactly.
    for jk in ("last", "concat"):
        params = make_params(k_params, HIDDEN, NUM_LAYER, OUTPUT_SIZE, jk=jk)
        out = node_classification_forward(
            a_hat, x, params["gcn_w"], params["gcn_b"],
            params["cls_w"], params["cls_b"], jk=jk, output_size=OUTPUT_SIZE)
        out = jax.block_until_ready(out)
        assert out.shape == (N_NODES, OUTPUT_SIZE), out.shape
        bias = params["cls_b"][0, :OUTPUT_SIZE]
        assert jnp.allclose(out, jnp.broadcast_to(bias, out.shape), atol=1e-6), jk

    # Extra numerical check of the fused GCN + classifier path with a non-zero
    # classifier weight (not part of module semantics; validates the kernel).
    jk = "concat"
    params = make_params(k_params, HIDDEN, NUM_LAYER, OUTPUT_SIZE, jk=jk)
    cls_w = 0.1 * jax.random.normal(k_cls, params["cls_w"].shape, jnp.float32)
    out = node_classification_forward(
        a_hat, x, params["gcn_w"], params["gcn_b"], cls_w, params["cls_b"],
        jk=jk, output_size=OUTPUT_SIZE)
    ref = reference_forward(
        a_hat, x, params["gcn_w"], params["gcn_b"], cls_w, params["cls_b"],
        jk=jk, output_size=OUTPUT_SIZE)
    out, ref = jax.block_until_ready((out, ref))
    assert jnp.allclose(out, ref, atol=1e-1, rtol=1e-1), float(
        jnp.max(jnp.abs(out - ref)))

    print("KERNEL_OK")
</pallas_src>

<mosaic_0001>
module attributes {stable_mosaic.version = 11 : i64} {
  func.func @_fused_gcn_kernel(%arg0: i32, %arg1: i32, %arg2: i32, %arg3: memref<256x128xbf16, #tpu.memory_space<vmem>>, %arg4: memref<128x128xbf16, #tpu.memory_space<vmem>>, %arg5: memref<1x128x128xbf16, #tpu.memory_space<vmem>>, %arg6: memref<1x1x128xf32, #tpu.memory_space<vmem>>, %arg7: memref<1x128x128xbf16, #tpu.memory_space<vmem>>, %arg8: memref<1x128xf32, #tpu.memory_space<vmem>>, %arg9: memref<128x128xf32, #tpu.memory_space<vmem>>, %arg10: memref<128x128xf32, #tpu.memory_space<vmem>>, %arg11: memref<6x128x128xbf16, #tpu.memory_space<vmem>>) attributes {dimension_semantics = [#tpu.dimension_semantics<arbitrary>, #tpu.dimension_semantics<arbitrary>, #tpu.dimension_semantics<arbitrary>], iteration_bounds = array<i64: 2, 2, 2>, scalar_prefetch = 0 : i64, scratch_operands = 2 : i64, tpu.core_type = #tpu.core_type<tc>, window_params = [{pipeline_mode = #tpu.pipeline_mode<synchronous>, transform_indices = @transform_0, window_bounds = array<i64: 256, 128>}, {transform_indices = @transform_1, window_bounds = array<i64: 128, 128>}, {transform_indices = @transform_2, window_bounds = array<i64: 1, 128, 128>}, {transform_indices = @transform_3, window_bounds = array<i64: 1, 1, 128>}, {pipeline_mode = #tpu.pipeline_mode<synchronous>, transform_indices = @transform_4, window_bounds = array<i64: 1, 128, 128>}, {pipeline_mode = #tpu.pipeline_mode<synchronous>, transform_indices = @transform_5, window_bounds = array<i64: 1, 128>}, {transform_indices = @transform_6, window_bounds = array<i64: 128, 128>}]} {
    %c0_i32 = arith.constant 0 : i32
    %0 = arith.cmpi eq, %arg0, %c0_i32 : i32
    %c0_i32_0 = arith.constant 0 : i32
    %1 = arith.cmpi eq, %arg1, %c0_i32_0 : i32
    %2 = arith.andi %0, %1 : i1
    %c0_i32_1 = arith.constant 0 : i32
    %3 = arith.cmpi eq, %arg2, %c0_i32_1 : i32
    %4 = arith.andi %2, %3 : i1
    %5 = arith.extui %4 : i1 to i32
    %c0_i32_2 = arith.constant 0 : i32
    %6 = arith.cmpi ne, %5, %c0_i32_2 : i32
    scf.if %6 {
      %c0_16 = arith.constant 0 : index
      %c0_17 = arith.constant 0 : index
      %28 = vector.load %arg3[%c0_16, %c0_17] : memref<256x128xbf16, #tpu.memory_space<vmem>>, vector<128x128xbf16>
      %c0_18 = arith.constant 0 : index
      %c0_19 = arith.constant 0 : index
      %c0_20 = arith.constant 0 : index
      %29 = vector.load %arg11[%c0_18, %c0_19, %c0_20] : memref<6x128x128xbf16, #tpu.memory_space<vmem>>, vector<1x128x128xbf16>
      %30 = vector.shape_cast %29 : vector<1x128x128xbf16> to vector<128x128xbf16>
      %31 = vector.shape_cast %28 : vector<128x128xbf16> to vector<1x128x128xbf16>
      tpu.vector_store %arg11[%c0_18, %c0_19, %c0_20], %31 {strides = array<i32>} : memref<6x128x128xbf16, #tpu.memory_space<vmem>>, vector<1x128x128xbf16>,
      %c128 = arith.constant 128 : index
      %c0_21 = arith.constant 0 : index
      %32 = vector.load %arg3[%c128, %c0_21] : memref<256x128xbf16, #tpu.memory_space<vmem>>, vector<128x128xbf16>
      %c1 = arith.constant 1 : index
      %c0_22 = arith.constant 0 : index
      %c0_23 = arith.constant 0 : index
      %33 = vector.load %arg11[%c1, %c0_22, %c0_23] : memref<6x128x128xbf16, #tpu.memory_space<vmem>>, vector<1x128x128xbf16>
      %34 = vector.shape_cast %33 : vector<1x128x128xbf16> to vector<128x128xbf16>
      %35 = vector.shape_cast %32 : vector<128x128xbf16> to vector<1x128x128xbf16>
      tpu.vector_store %arg11[%c1, %c0_22, %c0_23], %35 {strides = array<i32>} : memref<6x128x128xbf16, #tpu.memory_space<vmem>>, vector<1x128x128xbf16>,
    } else {
    }
    %c0_i32_3 = arith.constant 0 : i32
    %7 = arith.cmpi eq, %arg2, %c0_i32_3 : i32
    %8 = arith.extui %7 : i1 to i32
    %c0_i32_4 = arith.constant 0 : i32
    %9 = arith.cmpi ne, %8, %c0_i32_4 : i32
    scf.if %9 {
      %cst_16 = arith.constant 0.000000e+00 : f32
      %28 = vector.broadcast %cst_16 : f32 to vector<128x128xf32>
      %c0_17 = arith.constant 0 : index
      %c0_18 = arith.constant 0 : index
      %29 = vector.load %arg10[%c0_17, %c0_18] : memref<128x128xf32, #tpu.memory_space<vmem>>, vector<128x128xf32>
      tpu.vector_store %arg10[%c0_17, %c0_18], %28 {strides = array<i32>} : memref<128x128xf32, #tpu.memory_space<vmem>>, vector<128x128xf32>,
    } else {
    }
    %c2_i32 = arith.constant 2 : i32
    %10 = arith.muli %arg0, %c2_i32 : i32
    %11 = arith.addi %10, %arg2 : i32
    %12 = arith.index_cast %11 : i32 to index
    %c0 = arith.constant 0 : index
    %c0_5 = arith.constant 0 : index
    %13 = vector.load %arg11[%12, %c0, %c0_5] : memref<6x128x128xbf16, #tpu.memory_space<vmem>>, vector<1x128x128xbf16>
    %14 = vector.shape_cast %13 : vector<1x128x128xbf16> to vector<128x128xbf16>
    %c0_6 = arith.constant 0 : index
    %c0_7 = arith.constant 0 : index
    %15 = vector.load %arg10[%c0_6, %c0_7] : memref<128x128xf32, #tpu.memory_space<vmem>>, vector<128x128xf32>
    %c0_8 = arith.constant 0 : index
    %c0_9 = arith.constant 0 : index
    %16 = vector.load %arg4[%c0_8, %c0_9] : memref<128x128xbf16, #tpu.memory_space<vmem>>, vector<128x128xbf16>
    %cst = arith.constant dense<0.000000e+00> : vector<128x128xf32>
    %17 = tpu.matmul %16, %14, %cst {dimension_numbers = #tpu.dot_dimension_numbers<[1], [0], [0], [1], [0, 0, 1, 1], [], []>} : vector<128x128xbf16>, vector<128x128xbf16>, vector<128x128xf32> -> vector<128x128xf32>
    %18 = arith.addf %15, %17 : vector<128x128xf32>
    %c0_10 = arith.constant 0 : index
    %c0_11 = arith.constant 0 : index
    %19 = vector.load %arg10[%c0_10, %c0_11] : memref<128x128xf32, #tpu.memory_space<vmem>>, vector<128x128xf32>
    tpu.vector_store %arg10[%c0_10, %c0_11], %18 {strides = array<i32>} : memref<128x128xf32, #tpu.memory_space<vmem>>, vector<128x128xf32>,
    %c1_i32 = arith.constant 1 : i32
    %20 = arith.cmpi eq, %arg2, %c1_i32 : i32
    %21 = arith.extui %20 : i1 to i32
    %c0_i32_12 = arith.constant 0 : i32
    %22 = arith.cmpi ne, %21, %c0_i32_12 : i32
    scf.if %22 {
      %c0_16 = arith.constant 0 : index
      %c0_17 = arith.constant 0 : index
      %28 = vector.load %arg10[%c0_16, %c0_17] : memref<128x128xf32, #tpu.memory_space<vmem>>, vector<128x128xf32>
      %29 = arith.truncf %28 : vector<128x128xf32> to vector<128x128xbf16>
      %c0_18 = arith.constant 0 : index
      %c0_19 = arith.constant 0 : index
      %c0_20 = arith.constant 0 : index
      %30 = vector.load %arg5[%c0_18, %c0_19, %c0_20] : memref<1x128x128xbf16, #tpu.memory_space<vmem>>, vector<1x128x128xbf16>
      %31 = vector.shape_cast %30 : vector<1x128x128xbf16> to vector<128x128xbf16>
      %cst_21 = arith.constant dense<0.000000e+00> : vector<128x128xf32>
      %32 = tpu.matmul %29, %31, %cst_21 {dimension_numbers = #tpu.dot_dimension_numbers<[1], [0], [0], [1], [0, 0, 1, 1], [], []>} : vector<128x128xbf16>, vector<128x128xbf16>, vector<128x128xf32> -> vector<128x128xf32>
      %c0_22 = arith.constant 0 : index
      %c0_23 = arith.constant 0 : index
      %c0_24 = arith.constant 0 : index
      %33 = vector.load %arg6[%c0_22, %c0_23, %c0_24] : memref<1x1x128xf32, #tpu.memory_space<vmem>>, vector<1x1x128xf32>
      %34 = vector.shape_cast %33 : vector<1x1x128xf32> to vector<1x128xf32>
      %35 = vector.broadcast %34 : vector<1x128xf32> to vector<128x128xf32>
      %36 = arith.addf %32, %35 : vector<128x128xf32>
      %cst_25 = arith.constant 0.000000e+00 : f32
      %37 = vector.broadcast %cst_25 : f32 to vector<128x128xf32>
      %38 = arith.maximumf %36, %37 : vector<128x128xf32>
      %39 = arith.truncf %38 : vector<128x128xf32> to vector<128x128xbf16>
      %c1_i32_26 = arith.constant 1 : i32
      %40 = arith.addi %arg0, %c1_i32_26 : i32
      %c2_i32_27 = arith.constant 2 : i32
      %41 = arith.muli %40, %c2_i32_27 : i32
      %42 = arith.addi %41, %arg1 : i32
      %43 = arith.index_cast %42 : i32 to index
      %c0_28 = arith.constant 0 : index
      %c0_29 = arith.constant 0 : index
      %44 = vector.load %arg11[%43, %c0_28, %c0_29] : memref<6x128x128xbf16, #tpu.memory_space<vmem>>, vector<1x128x128xbf16>
      %45 = vector.shape_cast %44 : vector<1x128x128xbf16> to vector<128x128xbf16>
      %46 = vector.shape_cast %39 : vector<128x128xbf16> to vector<1x128x128xbf16>
      tpu.vector_store %arg11[%43, %c0_28, %c0_29], %46 {strides = array<i32>} : memref<6x128x128xbf16, #tpu.memory_space<vmem>>, vector<1x128x128xbf16>,
    } else {
    }
    %c1_i32_13 = arith.constant 1 : i32
    %23 = arith.cmpi eq, %arg2, %c1_i32_13 : i32
    %c1_i32_14 = arith.constant 1 : i32
    %24 = arith.cmpi eq, %arg0, %c1_i32_14 : i32
    %25 = arith.andi %23, %24 : i1
    %26 = arith.extui %25 : i1 to i32
    %c0_i32_15 = arith.constant 0 : i32
    %27 = arith.cmpi ne, %26, %c0_i32_15 : i32
    scf.if %27 {
      %c4_i32 = arith.constant 4 : i32
      %28 = arith.addi %c4_i32, %arg1 : i32
      %29 = arith.index_cast %28 : i32 to index
      %c0_16 = arith.constant 0 : index
      %c0_17 = arith.constant 0 : index
      %30 = vector.load %arg11[%29, %c0_16, %c0_17] : memref<6x128x128xbf16, #tpu.memory_space<vmem>>, vector<1x128x128xbf16>
      %31 = vector.shape_cast %30 : vector<1x128x128xbf16> to vector<128x128xbf16>
      %c0_18 = arith.constant 0 : index
      %c0_19 = arith.constant 0 : index
      %c0_20 = arith.constant 0 : index
      %32 = vector.load %arg7[%c0_18, %c0_19, %c0_20] : memref<1x128x128xbf16, #tpu.memory_space<vmem>>, vector<1x128x128xbf16>
      %33 = vector.shape_cast %32 : vector<1x128x128xbf16> to vector<128x128xbf16>
      %cst_21 = arith.constant dense<0.000000e+00> : vector<128x128xf32>
      %34 = tpu.matmul %31, %33, %cst_21 {dimension_numbers = #tpu.dot_dimension_numbers<[1], [0], [0], [1], [0, 0, 1, 1], [], []>} : vector<128x128xbf16>, vector<128x128xbf16>, vector<128x128xf32> -> vector<128x128xf32>
      %c0_22 = arith.constant 0 : index
      %c0_23 = arith.constant 0 : index
      %35 = vector.load %arg8[%c0_22, %c0_23] : memref<1x128xf32, #tpu.memory_space<vmem>>, vector<1x128xf32>
      %36 = vector.broadcast %35 : vector<1x128xf32> to vector<128x128xf32>
      %37 = arith.addf %34, %36 : vector<128x128xf32>
      %c0_24 = arith.constant 0 : index
      %c0_25 = arith.constant 0 : index
      %38 = vector.load %arg9[%c0_24, %c0_25] : memref<128x128xf32, #tpu.memory_space<vmem>>, vector<128x128xf32>
      tpu.vector_store %arg9[%c0_24, %c0_25], %37 {strides = array<i32>} : memref<128x128xf32, #tpu.memory_space<vmem>>, vector<128x128xf32>,
    } else {
    }
    return
  }
  func.func @transform_0(%arg0: i32, %arg1: i32, %arg2: i32) -> (i32, i32) {
    %c0_i32 = arith.constant 0 : i32
    %c0_i32_0 = arith.constant 0 : i32
    %c0_i32_1 = arith.constant 0 : i32
    return %c0_i32, %c0_i32_0 : i32, i32
  }
  func.func @transform_1(%arg0: i32, %arg1: i32, %arg2: i32) -> (i32, i32) {
    %c0_i32 = arith.constant 0 : i32
    return %arg1, %arg2 : i32, i32
  }
  func.func @transform_2(%arg0: i32, %arg1: i32, %arg2: i32) -> (i32, i32, i32) {
    %c0_i32 = arith.constant 0 : i32
    %c0_i32_0 = arith.constant 0 : i32
    %c0_i32_1 = arith.constant 0 : i32
    return %arg0, %c0_i32, %c0_i32_0 : i32, i32, i32
  }
  func.func @transform_3(%arg0: i32, %arg1: i32, %arg2: i32) -> (i32, i32, i32) {
    %c0_i32 = arith.constant 0 : i32
    %c0_i32_0 = arith.constant 0 : i32
    %c0_i32_1 = arith.constant 0 : i32
    return %arg0, %c0_i32, %c0_i32_0 : i32, i32, i32
  }
  func.func @transform_4(%arg0: i32, %arg1: i32, %arg2: i32) -> (i32, i32, i32) {
    %c0_i32 = arith.constant 0 : i32
    %c0_i32_0 = arith.constant 0 : i32
    %c0_i32_1 = arith.constant 0 : i32
    %c0_i32_2 = arith.constant 0 : i32
    return %c0_i32, %c0_i32_0, %c0_i32_1 : i32, i32, i32
  }
  func.func @transform_5(%arg0: i32, %arg1: i32, %arg2: i32) -> (i32, i32) {
    %c0_i32 = arith.constant 0 : i32
    %c0_i32_0 = arith.constant 0 : i32
    %c0_i32_1 = arith.constant 0 : i32
    return %c0_i32, %c0_i32_0 : i32, i32
  }
  func.func @transform_6(%arg0: i32, %arg1: i32, %arg2: i32) -> (i32, i32) {
    %c0_i32 = arith.constant 0 : i32
    %c0_i32_0 = arith.constant 0 : i32
    return %arg1, %c0_i32 : i32, i32
  }
}

</mosaic_0001>

<bundles_post_ra>
// kernel: node_classification_forward.1
= control target key start
LH: loop header
LB: loop body
LE: loop exit
PB: predicated region body
PF: predicated region fallthrough
CT: control target
= control target key end

     0   :  { %s2354_s0 = inlined_call_operand.vmem [shape: bf16[256,128], index: 0, kind: input, shape index: {}]   ;;  %s2355_s1 = inlined_call_operand.vmem [shape: bf16[256,256], index: 1, kind: input, shape index: {}]   ;;  %s2356_s2 = inlined_call_operand.vmem [shape: bf16[2,128,128], index: 2, kind: input, shape index: {}]   ;;  %s2357_s3 = inlined_call_operand.vmem [shape: f32[2,1,128], index: 3, kind: input, shape index: {}]   ;;  %s2358_s4 = inlined_call_operand.vmem [shape: bf16[1,128,128], index: 4, kind: input, shape index: {}]   ;;  %s2359_s5 = inlined_call_operand.vmem [shape: f32[1,128], index: 5, kind: input, shape index: {}]   ;;  %s2360_s6 = inlined_call_operand.vmem [shape: f32[256,128], index: 6, kind: output, shape index: {}]  }
   0x1   :  { %2362 = sst [smem:[#allocation7_spill]] %s2355_s1 }
   0x2   :  { %s2051_s21 = smov 0   ;;  %s2053_s22 = smov 0  }
   0x3   :  { %s2055_s23 = smov 0   ;;  %s2057_s24 = smov 0  }
   0x4   :  { %s2059_s25 = smov 0   ;;  %s2061_s26 = smov 0  }
   0x5   :  { %s2063_s27 = smov 0   ;;  %s2065_s28 = smov 0  }
   0x6   :  { %s2067_s29 = smov 0  }
   0x7 LB: > { %s28_s30 = sadd.s32 1, %s2001_s26  ;;  %s31_s7 = sadd.s32 1, %s2005_s27  ;;  %s2013_s29 = sphi %s2067_s29, %s16_s29   ;;  %s2009_s28 = sphi %s2065_s28, %s2375_s28   ;;  %s2005_s27 = sphi %s2063_s27, %s2374_s27   ;;  %s2001_s26 = sphi %s2061_s26, %s2373_s26   ;;  %s1997_s25 = sphi %s2059_s25, %s2372_s25   ;;  %s1993_s24 = sphi %s2057_s24, %s2371_s24   ;;  %s1989_s23 = sphi %s2055_s23, %s2370_s23   ;;  %s1985_s22 = sphi %s2053_s22, %s2369_s22   ;;  %s1981_s21 = sphi %s2051_s21, %s2368_s21  }
   0x8   : > { %p29_p0 = scmp.ge.s32.totalorder %s28_s30, 2  ;;  %p72_p1 = scmp.ne.s32.totalorder %s1985_s22, %s1981_s21 }
   0x9   : > { %p73_p2 = scmp.eq.s32.totalorder %s2013_s29, 0  ;;  %s35_s8 = sadd.s32 1, %s2009_s28 }
   0xa   : > { %s2377_s30 = smov (%p29_p0, %s28_s30), 0  ;;  %s2379_s7 = smov (!%p29_p0, %s31_s7), %s2005_s27 }
   0xb   : > { %p33_p3 = scmp.ge.s32.totalorder %s2379_s7, 2  ;;  %s61_s9 = ssub.s32 %s2001_s26, %s2377_s30 }
   0xc   : > { %p74_p4 = por %p73_p2, %p72_p1  ;;  %s65_s11 = sadd.s32 1, %s1985_s22 }
   0xd   : > { %s2381_s7 = smov (%p33_p3, %s2379_s7), 0  ;;  %s2383_s8 = smov (!%p33_p3, %s35_s8), %s2009_s28 }
   0xe   : > { %2363 = sst [smem:[#allocation5_spill]] %s2381_s7  ;;  %s60_s10 = ssub.s32 %s2005_s27, %s2381_s7 }
   0xf   : > { %p37_p5 = scmp.ge.s32.totalorder %s2383_s8, 2  ;;  %s62_s12 = sor.u32 %s61_s9, %s60_s10 }
  0x10   : > { %p63_p6 = scmp.eq.s32.totalorder %s62_s12, 0  ;;  %p1460_p7 = scmp.ge.s32.totalorder %s2013_s29, 8 }
  0x11   : > { %s2385_s8 = smov (%p37_p5, %s2383_s8), 0 }
  0x12   : > { %2364 = sst [smem:[#allocation6_spill]] %s2385_s8  ;;  %227 = sbr.rel (%p1460_p7) target bundleno = 43 (0x2b), region = 28 }
  0x13   : > { %s2116_s13 = scalar_select %p63_p6, %s1985_s22, %s65_s11  }
  0x17   : > { %230 = sbr.rel (!%p74_p4) target bundleno = 43 (0x2b), region = 32  ;;  %s232_s14 = sand.u32 (%p74_p4), 1, %s1985_s22  }
  0x18   : > { %s1571_s15 = sshll.u32 (%p74_p4), %s2005_s27, 5  ;;  %s1461_s16 = sshll.u32 (%p74_p4), %s232_s14, 6 }
  0x19   : > { %s237_s17 = sadd.s32 (%p74_p4), %s2001_s26, %s1571_s15  ;;  %s2365_s1 = sld [smem:[#allocation7_spill]] (%p74_p4) }
  0x1a   : > { %s1464_s18 = sshll.u32 (%p74_p4), %s237_s17, 2  ;;  %s234_s10 = scalar_lea.vmem (%p74_p4), [#allocation4], %s1461_s16 }
  0x1f   : > { %s2125_s9 = scalar_lea.vmem %s2365_s1, %s1464_s18 }
  0x20   : > { %v256_v0 = vld [vmem:[%s2125_s9] sm:$0xf]  ;;  %v258_v1 = vld [vmem:[%s2125_s9 + $0x8] sm:$0xf]  ;;  %v260_v2 = vld [vmem:[%s2125_s9 + $0x10] sm:$0xf] }
  0x21   : > { %257 = vst [vmem:[%s234_s10] sm:$0xf] %v256_v0  ;;  %259 = vst [vmem:[%s234_s10 + $0x4] sm:$0xf] %v258_v1  ;;  %v262_v3 = vld [vmem:[%s2125_s9 + $0x18] sm:$0xf] }
  0x22   : > { %261 = vst [vmem:[%s234_s10 + $0x8] sm:$0xf] %v260_v2  ;;  %v264_v4 = vld [vmem:[%s2125_s9 + $0x20] sm:$0xf]  ;;  %v266_v5 = vld [vmem:[%s2125_s9 + $0x28] sm:$0xf] }
  0x23   : > { %263 = vst [vmem:[%s234_s10 + $0xc] sm:$0xf] %v262_v3  ;;  %265 = vst [vmem:[%s234_s10 + $0x10] sm:$0xf] %v264_v4  ;;  %v268_v6 = vld [vmem:[%s2125_s9 + $0x30] sm:$0xf] }
  0x24   : > { %267 = vst [vmem:[%s234_s10 + $0x14] sm:$0xf] %v266_v5  ;;  %v270_v7 = vld [vmem:[%s2125_s9 + $0x38] sm:$0xf]  ;;  %v272_v8 = vld [vmem:[%s2125_s9 + $0x40] sm:$0xf] }
  0x25   : > { %269 = vst [vmem:[%s234_s10 + $0x18] sm:$0xf] %v268_v6  ;;  %271 = vst [vmem:[%s234_s10 + $0x1c] sm:$0xf] %v270_v7  ;;  %v274_v9 = vld [vmem:[%s2125_s9 + $0x48] sm:$0xf] }
  0x26   : > { %273 = vst [vmem:[%s234_s10 + $0x20] sm:$0xf] %v272_v8  ;;  %v276_v10 = vld [vmem:[%s2125_s9 + $0x50] sm:$0xf]  ;;  %v278_v11 = vld [vmem:[%s2125_s9 + $0x58] sm:$0xf] }
  0x27   : > { %275 = vst [vmem:[%s234_s10 + $0x24] sm:$0xf] %v274_v9  ;;  %277 = vst [vmem:[%s234_s10 + $0x28] sm:$0xf] %v276_v10  ;;  %v280_v12 = vld [vmem:[%s2125_s9 + $0x60] sm:$0xf] }
  0x28   : > { %279 = vst [vmem:[%s234_s10 + $0x2c] sm:$0xf] %v278_v11  ;;  %v282_v13 = vld [vmem:[%s2125_s9 + $0x68] sm:$0xf]  ;;  %v284_v14 = vld [vmem:[%s2125_s9 + $0x70] sm:$0xf] }
  0x29   : > { %281 = vst [vmem:[%s234_s10 + $0x30] sm:$0xf] %v280_v12  ;;  %283 = vst [vmem:[%s234_s10 + $0x34] sm:$0xf] %v282_v13  ;;  %v286_v15 = vld [vmem:[%s2125_s9 + $0x78] sm:$0xf] }
  0x2a   : > { %285 = vst [vmem:[%s234_s10 + $0x38] sm:$0xf] %v284_v14  ;;  %287 = vst [vmem:[%s234_s10 + $0x3c] sm:$0xf] %v286_v15 }
  0x2b PF: > { %p1465_p8 = scmp.ge.s32.totalorder %s2013_s29, 1  ;;  %p356_p9 = scmp.lt.s32.totalorder %s2013_s29, 9 }
  0x2d   : > { %p357_p10 = pnand %p1465_p8, %p356_p9 }
  0x2e   : > { %s363_s11 = sand.u32 (!%p357_p10), 1, %s1981_s21   ;;  %p401_p11 = scmp.lt.s32.totalorder (!%p357_p10), %s1997_s25, 1 }
  0x2f   : > { %360 = sbr.rel (%p357_p10) target bundleno = 834 (0x342), region = 81  ;;  %s1466_s12 = sshll.u32 (!%p357_p10), %s363_s11, 6 }
  0x30   : > { %s1469_s14 = sshll.u32 (!%p357_p10), %s1993_s24, 4  ;;  %p416_p13 = scmp.eq.s32.totalorder (!%p357_p10), %s1997_s25, 0 }
  0x31   : > { %p410_p12 = scmp.lt.s32.totalorder (!%p357_p10), %s1469_s14, 31  ;;  %p417_p0 = scmp.eq.s32.totalorder (!%p357_p10), %s1993_s24, 0 }
  0x32   : > { %p420_p2 = scmp.eq.s32.totalorder (!%p357_p10), %s1989_s23, 0  ;;  %s2169_s7 = scalar_lea.vmem (!%p357_p10), [#allocation4], %s1466_s12 }
  0x33   : > { %p418_p1 = pnand (!%p357_p10), %p417_p0, %p416_p13 }
  0x34   : > { %s2149_s15 = scalar_select %p401_p11, %s1997_s25, 1 }
  0x35   : > { %s2387_s14 = smov (!%p410_p12, %s1469_s14), 31  ;;  %p419_p3 = pneg %p418_p1 }
  0x36   : > { %s1572_s16 = sshll.u32 %s2149_s15, 6  ;;  %s408_s19 = scalar_lea.vmem %s2357_s3, %s2149_s15 }
  0x37   : > { %s2159_s10 = scalar_lea.vmem %s2356_s2, %s1572_s16  ;;  %s1470_s21 = sshll.u32 %s2387_s14, 3 }
  0x38   : > { %s2164_s8 = scalar_lea.vmem %s2360_s6, %s1470_s21  ;;  %p421_p4 = pnand %p420_p2, %p419_p3 }
  0x3a   : > { %424 = sbr.rel (%p421_p4) target bundleno = 72 (0x48), region = 89 }
  0x3f   : > { %v425_v16 = vld [vmem:[%s2354_s0] sm:$0xff]   ;;  %v427_v17 = vld [vmem:[%s2354_s0 + $0x8] sm:$0xff]   ;;  %v429_v18 = vld [vmem:[%s2354_s0 + $0x10] sm:$0xff]  }
  0x40   : > { %441 = vst [vmem:[#allocation3] sm:$0xff] %v425_v16   ;;  %443 = vst [vmem:[#allocation3 + $0x8] sm:$0xff] %v427_v17   ;;  %v431_v19 = vld [vmem:[%s2354_s0 + $0x18] sm:$0xff]   ;;  %v433_v20 = vld [vmem:[%s2354_s0 + $0x20] sm:$0xff]  }
  0x41   : > { %445 = vst [vmem:[#allocation3 + $0x10] sm:$0xff] %v429_v18   ;;  %v435_v21 = vld [vmem:[%s2354_s0 + $0x28] sm:$0xff]   ;;  %447 = vst [vmem:[#allocation3 + $0x18] sm:$0xff] %v431_v19   ;;  %v437_v22 = vld [vmem:[%s2354_s0 + $0x30] sm:$0xff]  }
  0x42   : > { %449 = vst [vmem:[#allocation3 + $0x20] sm:$0xff] %v433_v20   ;;  %451 = vst [vmem:[#allocation3 + $0x28] sm:$0xff] %v435_v21   ;;  %v439_v23 = vld [vmem:[%s2354_s0 + $0x38] sm:$0xff]   ;;  %v457_v24 = vld [vmem:[%s2354_s0 + $0x40] sm:$0xff]  }
  0x43   : > { %453 = vst [vmem:[#allocation3 + $0x30] sm:$0xff] %v437_v22   ;;  %455 = vst [vmem:[#allocation3 + $0x38] sm:$0xff] %v439_v23   ;;  %v459_v25 = vld [vmem:[%s2354_s0 + $0x48] sm:$0xff]   ;;  %v461_v26 = vld [vmem:[%s2354_s0 + $0x50] sm:$0xff]  }
  0x44   : > { %474 = vst [vmem:[#allocation3 + $0x40] sm:$0xff] %v457_v24   ;;  %v463_v27 = vld [vmem:[%s2354_s0 + $0x58] sm:$0xff]   ;;  %476 = vst [vmem:[#allocation3 + $0x48] sm:$0xff] %v459_v25   ;;  %v465_v28 = vld [vmem:[%s2354_s0 + $0x60] sm:$0xff]  }
  0x45   : > { %478 = vst [vmem:[#allocation3 + $0x50] sm:$0xff] %v461_v26   ;;  %480 = vst [vmem:[#allocation3 + $0x58] sm:$0xff] %v463_v27   ;;  %v467_v29 = vld [vmem:[%s2354_s0 + $0x68] sm:$0xff]   ;;  %v469_v30 = vld [vmem:[%s2354_s0 + $0x70] sm:$0xff]  }
  0x46   : > { %482 = vst [vmem:[#allocation3 + $0x60] sm:$0xff] %v465_v28   ;;  %484 = vst [vmem:[#allocation3 + $0x68] sm:$0xff] %v467_v29   ;;  %v471_v31 = vld [vmem:[%s2354_s0 + $0x78] sm:$0xff]  }
  0x47   : > { %486 = vst [vmem:[#allocation3 + $0x70] sm:$0xff] %v469_v30   ;;  %488 = vst [vmem:[#allocation3 + $0x78] sm:$0xff] %v471_v31  }
  0x48 PF: > { %p1471_p5 = scmp.ne.s32.totalorder %s1989_s23, 0 }
  0x4a   : > { %492 = sbr.rel (%p1471_p5) target bundleno = 88 (0x58), region = 93 }
  0x4f   : > { %v2015_v32 = vmov 0.0  }
  0x50   : > { %493 = vst [vmem:[#allocation2 + $0x30] sm:$0xff] %v2015_v32  ;;  %494 = vst [vmem:[#allocation2] sm:$0xff] %v2015_v32 }
  0x51   : > { %495 = vst [vmem:[#allocation2 + $0x58] sm:$0xff] %v2015_v32  ;;  %496 = vst [vmem:[#allocation2 + $0x18] sm:$0xff] %v2015_v32 }
  0x52   : > { %497 = vst [vmem:[#allocation2 + $0x50] sm:$0xff] %v2015_v32  ;;  %498 = vst [vmem:[#allocation2 + $0x68] sm:$0xff] %v2015_v32 }
  0x53   : > { %499 = vst [vmem:[#allocation2 + $0x8] sm:$0xff] %v2015_v32  ;;  %500 = vst [vmem:[#allocation2 + $0x48] sm:$0xff] %v2015_v32 }
  0x54   : > { %501 = vst [vmem:[#allocation2 + $0x40] sm:$0xff] %v2015_v32  ;;  %502 = vst [vmem:[#allocation2 + $0x20] sm:$0xff] %v2015_v32 }
  0x55   : > { %503 = vst [vmem:[#allocation2 + $0x10] sm:$0xff] %v2015_v32  ;;  %504 = vst [vmem:[#allocation2 + $0x38] sm:$0xff] %v2015_v32 }
  0x56   : > { %505 = vst [vmem:[#allocation2 + $0x60] sm:$0xff] %v2015_v32  ;;  %506 = vst [vmem:[#allocation2 + $0x70] sm:$0xff] %v2015_v32 }
  0x57   : > { %507 = vst [vmem:[#allocation2 + $0x78] sm:$0xff] %v2015_v32  ;;  %508 = vst [vmem:[#allocation2 + $0x28] sm:$0xff] %v2015_v32 }
  0x58 PF: > { %s1472_s16 = sshll.u32 %s1997_s25, 1  ;;  %v1911_v33 = vld [vmem:[%s2169_s7] sm:$0xff]   ;;  %v1913_v43 = vld [vmem:[%s2169_s7 + $0x8] sm:$0xff]   ;;  %v1915_v45 = vld [vmem:[%s2169_s7 + $0x10] sm:$0xff]   ;;  %p787_p6 = scmp.eq.s32.totalorder %s1989_s23, 1 }
  0x59   : > { %s510_s14 = sadd.s32 %s1989_s23, %s1472_s16  ;;  %v1912_v34 = vld [vmem:[%s2169_s7 + $0x20] sm:$0xff]   ;;  %1702 = vmatprep.mubr.bf16.mxu0 %v1911_v33  ;;  %v1914_v44 = vld [vmem:[%s2169_s7 + $0x28] sm:$0xff]   ;;  %v1916_v46 = vld [vmem:[%s2169_s7 + $0x30] sm:$0xff]   ;;  %p1491_p7 = scmp.ne.s32.totalorder %s1989_s23, 1 }
  0x5a   : > { %s1573_s1 = sshll.u32 %s510_s14, 6  ;;  %1710 = vmatprep.mubr.bf16.mxu1 %v1912_v34  ;;  %v1917_v47 = vld [vmem:[%s2169_s7 + $0x18] sm:$0xff]   ;;  %v530_v53 = vld [vmem:[#allocation2 + $0x30] sm:$0xff]  ;;  %v531_v1 = vld [vmem:[#allocation2] sm:$0xff]  ;;  %s1392_s9 = sadd.s32 (!%p1491_p7), %s1993_s24, %s1472_s16 }
  0x5b   : > { %s2226_s20 = scalar_lea.vmem [#allocation3], %s1573_s1  ;;  %v1918_v48 = vld [vmem:[%s2169_s7 + $0x38] sm:$0xff]   ;;  %v538_v54 = vld [vmem:[#allocation2 + $0x40] sm:$0xff]  ;;  %v536_v7 = vld [vmem:[#allocation2 + $0x8] sm:$0xff]  ;;  %s1518_s21 = sshll.u32 (!%p1491_p7), %s1392_s9, 6 }
  0x5c   : > { %v1903_v35 = vld [vmem:[%s2226_s20 + $0x38] sm:$0xff]   ;;  %v1904_v36 = vld [vmem:[%s2226_s20 + $0x30] sm:$0xff]   ;;  %v1905_v37 = vld [vmem:[%s2226_s20 + $0x28] sm:$0xff]   ;;  %s2260_s15 = scalar_lea.vmem (!%p1491_p7), [#allocation3], %s1518_s21 }
  0x5d   : > { %1686 = vmatprep.subr.bf16.mxu0 %v1903_v35  ;;  %1782 = vmatprep.subr.bf16.mxu1 %v1903_v35  ;;  %v1906_v38 = vld [vmem:[%s2226_s20 + $0x20] sm:$0xff]   ;;  %v1907_v39 = vld [vmem:[%s2226_s20 + $0x18] sm:$0xff]   ;;  %v1908_v40 = vld [vmem:[%s2226_s20 + $0x10] sm:$0xff]  }
  0x5e   : > { %1687 = vmatpush3.bf16.msra.mxu0 %v1903_v35  ;;  %1790 = vmatpush3.bf16.msra.mxu1 %v1903_v35  ;;  %v1909_v41 = vld [vmem:[%s2226_s20 + $0x8] sm:$0xff]   ;;  %v1910_v42 = vld [vmem:[%s2226_s20] sm:$0xff]   ;;  %v532_v49 = vld [vmem:[#allocation2 + $0x58] sm:$0xff] }
  0x5f   : > { %1688 = vmatprep.subr.bf16.mxu0 %v1904_v36  ;;  %1783 = vmatprep.subr.bf16.mxu1 %v1904_v36  ;;  %v540_v50 = vld [vmem:[#allocation2 + $0x10] sm:$0xff]  ;;  %v533_v59 = vld [vmem:[#allocation2 + $0x18] sm:$0xff]  ;;  %v539_v2 = vld [vmem:[#allocation2 + $0x20] sm:$0xff] }
  0x60   : > { %v541_v60 = vld [vmem:[#allocation2 + $0x38] sm:$0xff]  ;;  %v534_v13 = vld [vmem:[#allocation2 + $0x50] sm:$0xff]  ;;  %v542_v14 = vld [vmem:[#allocation2 + $0x60] sm:$0xff] }
  0x61   : > { %v544_v8 = vld [vmem:[#allocation2 + $0x78] sm:$0xff]  ;;  %v537_v19 = vld [vmem:[#allocation2 + $0x48] sm:$0xff]  ;;  %v543_v26 = vld [vmem:[#allocation2 + $0x70] sm:$0xff] }
  0x62   : > { %1689 = vmatpush3.bf16.msra.mxu0 %v1904_v36  ;;  %1791 = vmatpush3.bf16.msra.mxu1 %v1904_v36  ;;  %v545_v20 = vld [vmem:[#allocation2 + $0x28] sm:$0xff] }
  0x63   : > { %1690 = vmatprep.subr.bf16.mxu0 %v1905_v37  ;;  %1784 = vmatprep.subr.bf16.mxu1 %v1905_v37  ;;  %v535_v25 = vld [vmem:[#allocation2 + $0x68] sm:$0xff] }
  0x66   : > { %1691 = vmatpush3.bf16.msra.mxu0 %v1905_v37  ;;  %1792 = vmatpush3.bf16.msra.mxu1 %v1905_v37 }
  0x67   : > { %1692 = vmatprep.subr.bf16.mxu0 %v1906_v38  ;;  %1785 = vmatprep.subr.bf16.mxu1 %v1906_v38 }
  0x6a   : > { %1693 = vmatpush3.bf16.msra.mxu0 %v1906_v38  ;;  %1793 = vmatpush3.bf16.msra.mxu1 %v1906_v38 }
  0x6b   : > { %1694 = vmatprep.subr.bf16.mxu0 %v1907_v39  ;;  %1786 = vmatprep.subr.bf16.mxu1 %v1907_v39 }
  0x6e   : > { %1695 = vmatpush3.bf16.msra.mxu0 %v1907_v39  ;;  %1794 = vmatpush3.bf16.msra.mxu1 %v1907_v39 }
  0x6f   : > { %1696 = vmatprep.subr.bf16.mxu0 %v1908_v40  ;;  %1787 = vmatprep.subr.bf16.mxu1 %v1908_v40 }
  0x72   : > { %1697 = vmatpush3.bf16.msra.mxu0 %v1908_v40  ;;  %1795 = vmatpush3.bf16.msra.mxu1 %v1908_v40 }
  0x73   : > { %1698 = vmatprep.subr.bf16.mxu0 %v1909_v41  ;;  %1788 = vmatprep.subr.bf16.mxu1 %v1909_v41 }
  0x76   : > { %1699 = vmatpush3.bf16.msra.mxu0 %v1909_v41  ;;  %1796 = vmatpush3.bf16.msra.mxu1 %v1909_v41 }
  0x77   : > { %1700 = vmatprep.subr.bf16.mxu0 %v1910_v42  ;;  %1789 = vmatprep.subr.bf16.mxu1 %v1910_v42 }
  0x7a   : > { %1701 = vmatpush3.bf16.msra.mxu0 %v1910_v42  ;;  %1797 = vmatpush3.bf16.msra.mxu1 %v1910_v42 }
  0x7d   : > { %1703 = vmatmul.mubr.bf16.vlgmr.msra.gmra.mxu0 %v1913_v43  ;;  %1711 = vmatmul.mubr.bf16.vlgmr.msra.gmra.mxu1 %v1914_v44 }
  0x7e   : > { %1706 = vmatprep.mubr.bf16.mxu0 %v1915_v45  ;;  %1714 = vmatprep.mubr.bf16.mxu1 %v1916_v46 }
  0x85   : > { %1707 = vmatmul.mubr.bf16.gmra.mxu0 %v1917_v47  ;;  %1715 = vmatmul.mubr.bf16.gmra.mxu1 %v1918_v48 }
 0x13d   : > { %v1704_v51 = vpop.f32.mrf.mxu0  ;;  %v1712_v52 = vpop.f32.mrf.mxu1 }
 0x13e   : > { %v757_v55 = vadd.f32 %v1704_v51, %v532_v49  ;;  %v765_v56 = vadd.f32 %v1712_v52, %v540_v50 }
 0x13f   : > { %v692_v57 = vpop.f32.mrf.mxu0  ;;  %v724_v58 = vpop.f32.mrf.mxu1 }
 0x140   : > { %773 = vst [vmem:[#allocation2 + $0x58] sm:$0xff] %v757_v55  ;;  %781 = vst [vmem:[#allocation2 + $0x10] sm:$0xff] %v765_v56  ;;  %v755_v61 = vadd.f32 %v692_v57, %v530_v53  ;;  %v763_v62 = vadd.f32 %v724_v58, %v538_v54 }
 0x141   : > { %v1705_v63 = vpop.f32.mrf.mxu0  ;;  %v1713_v0 = vpop.f32.mrf.mxu1 }
 0x142   : > { %771 = vst [vmem:[#allocation2 + $0x30] sm:$0xff] %v755_v61  ;;  %779 = vst [vmem:[#allocation2 + $0x40] sm:$0xff] %v763_v62  ;;  %v758_v3 = vadd.f32 %v1705_v63, %v533_v59  ;;  %v766_v4 = vadd.f32 %v1713_v0, %v541_v60 }
 0x143   : > { %v695_v5 = vpop.f32.mrf.mxu0  ;;  %v727_v6 = vpop.f32.mrf.mxu1 }
 0x144   : > { %774 = vst [vmem:[#allocation2 + $0x18] sm:$0xff] %v758_v3  ;;  %782 = vst [vmem:[#allocation2 + $0x38] sm:$0xff] %v766_v4  ;;  %v756_v9 = vadd.f32 %v695_v5, %v531_v1  ;;  %v764_v10 = vadd.f32 %v727_v6, %v539_v2 }
 0x145   : > { %v1708_v11 = vpop.f32.mrf.mxu0  ;;  %v1716_v12 = vpop.f32.mrf.mxu1 }
 0x146   : > { %772 = vst [vmem:[#allocation2] sm:$0xff] %v756_v9  ;;  %780 = vst [vmem:[#allocation2 + $0x20] sm:$0xff] %v764_v10  ;;  %v761_v15 = vadd.f32 %v1708_v11, %v536_v7  ;;  %v769_v16 = vadd.f32 %v1716_v12, %v544_v8 }
 0x147   : > { %v708_v17 = vpop.f32.mrf.mxu0  ;;  %v740_v18 = vpop.f32.mrf.mxu1 }
 0x148   : > { %777 = vst [vmem:[#allocation2 + $0x8] sm:$0xff] %v761_v15  ;;  %785 = vst [vmem:[#allocation2 + $0x78] sm:$0xff] %v769_v16  ;;  %v759_v21 = vadd.f32 %v708_v17, %v534_v13  ;;  %v767_v22 = vadd.f32 %v740_v18, %v542_v14 }
 0x149   : > { %v1709_v23 = vpop.f32.mrf.mxu0  ;;  %v1717_v24 = vpop.f32.mrf.mxu1 }
 0x14a   : > { %775 = vst [vmem:[#allocation2 + $0x50] sm:$0xff] %v759_v21  ;;  %783 = vst [vmem:[#allocation2 + $0x60] sm:$0xff] %v767_v22  ;;  %v762_v27 = vadd.f32 %v1709_v23, %v537_v19  ;;  %v770_v28 = vadd.f32 %v1717_v24, %v545_v20  ;;  %790 = sbr.rel (%p1491_p7) target bundleno = 582 (0x246), region = 97 }
 0x14b   : > { %v711_v29 = vpop.f32.mrf.mxu0  ;;  %v743_v30 = vpop.f32.mrf.mxu1 }
 0x14c   : > { %778 = vst [vmem:[#allocation2 + $0x48] sm:$0xff] %v762_v27  ;;  %786 = vst [vmem:[#allocation2 + $0x28] sm:$0xff] %v770_v28  ;;  %v760_v31 = vadd.f32 %v711_v29, %v535_v25  ;;  %v768_v32 = vadd.f32 %v743_v30, %v543_v26 }
 0x14e   : > { %776 = vst [vmem:[#allocation2 + $0x68] sm:$0xff] %v760_v31  ;;  %784 = vst [vmem:[#allocation2 + $0x70] sm:$0xff] %v768_v32 }
 0x14f   : > { %v1919_v33 = vld [vmem:[%s2159_s10 + $0x38] sm:$0xff]   ;;  %v1920_v34 = vld [vmem:[%s2159_s10 + $0x30] sm:$0xff]   ;;  %v1921_v35 = vld [vmem:[%s2159_s10 + $0x28] sm:$0xff]  }
 0x150   : > { %1718 = vmatprep.subr.bf16.mxu0 %v1919_v33  ;;  %1798 = vmatprep.subr.bf16.mxu1 %v1919_v33  ;;  %v1922_v36 = vld [vmem:[%s2159_s10 + $0x20] sm:$0xff]   ;;  %v791_v37 = vld [vmem:[#allocation2 + $0x30] sm:$0xff]  ;;  %v1923_v43 = vld [vmem:[%s2159_s10 + $0x18] sm:$0xff]  }
 0x151   : > { %1719 = vmatpush3.bf16.msra.mxu0 %v1919_v33  ;;  %1806 = vmatpush3.bf16.msra.mxu1 %v1919_v33  ;;  %v792_v38 = vld [vmem:[#allocation2] sm:$0xff]  ;;  %v1924_v44 = vld [vmem:[%s2159_s10 + $0x10] sm:$0xff]   ;;  %v1925_v45 = vld [vmem:[%s2159_s10 + $0x8] sm:$0xff]  }
 0x152   : > { %1720 = vmatprep.subr.bf16.mxu0 %v1920_v34  ;;  %1799 = vmatprep.subr.bf16.mxu1 %v1920_v34  ;;  %v799_v39 = vld [vmem:[#allocation2 + $0x40] sm:$0xff]  ;;  %v807_v40 = vpack.c.bf16 %v792_v38, %v791_v37  ;;  %v793_v47 = vld [vmem:[#allocation2 + $0x58] sm:$0xff]  ;;  %v801_v49 = vld [vmem:[#allocation2 + $0x10] sm:$0xff] }
 0x153   : > { %v800_v41 = vld [vmem:[#allocation2 + $0x20] sm:$0xff]  ;;  %v794_v48 = vld [vmem:[#allocation2 + $0x18] sm:$0xff]  ;;  %v795_v51 = vld [vmem:[#allocation2 + $0x50] sm:$0xff] }
 0x154   : > { %v811_v42 = vpack.c.bf16 %v800_v41, %v799_v39  ;;  %1734 = vmatprep.mubr.bf16.mxu0 %v807_v40  ;;  %v1926_v46 = vld [vmem:[%s2159_s10] sm:$0xff]   ;;  %v802_v50 = vld [vmem:[#allocation2 + $0x38] sm:$0xff]  ;;  %v808_v55 = vpack.c.bf16 %v794_v48, %v793_v47  ;;  %v797_v59 = vld [vmem:[#allocation2 + $0x8] sm:$0xff] }
 0x155   : > { %1721 = vmatpush3.bf16.msra.mxu0 %v1920_v34  ;;  %1807 = vmatpush3.bf16.msra.mxu1 %v1920_v34  ;;  %v796_v52 = vld [vmem:[#allocation2 + $0x68] sm:$0xff]  ;;  %v803_v53 = vld [vmem:[#allocation2 + $0x60] sm:$0xff]  ;;  %v804_v54 = vld [vmem:[#allocation2 + $0x70] sm:$0xff]  ;;  %v812_v56 = vpack.c.bf16 %v802_v50, %v801_v49 }
 0x156   : > { %1722 = vmatprep.subr.bf16.mxu0 %v1921_v35  ;;  %1800 = vmatprep.subr.bf16.mxu1 %v1921_v35  ;;  %v809_v57 = vpack.c.bf16 %v796_v52, %v795_v51  ;;  %v813_v58 = vpack.c.bf16 %v804_v54, %v803_v53  ;;  %v798_v60 = vld [vmem:[#allocation2 + $0x48] sm:$0xff]  ;;  %v805_v61 = vld [vmem:[#allocation2 + $0x78] sm:$0xff]  ;;  %v1492_v1 = vld [vmem:[%s408_s19] ss:$0 sm:$0xff] }
 0x157   : > { %1742 = vmatprep.mubr.bf16.mxu1 %v811_v42  ;;  %v806_v62 = vld [vmem:[#allocation2 + $0x28] sm:$0xff]  ;;  %v810_v63 = vpack.c.bf16 %v798_v60, %v797_v59 }
 0x158   : > { %v814_v0 = vpack.c.bf16 %v806_v62, %v805_v61 }
 0x159   : > { %1723 = vmatpush3.bf16.msra.mxu0 %v1921_v35  ;;  %1808 = vmatpush3.bf16.msra.mxu1 %v1921_v35 }
 0x15a   : > { %1724 = vmatprep.subr.bf16.mxu0 %v1922_v36  ;;  %1801 = vmatprep.subr.bf16.mxu1 %v1922_v36 }
 0x15d   : > { %1725 = vmatpush3.bf16.msra.mxu0 %v1922_v36  ;;  %1809 = vmatpush3.bf16.msra.mxu1 %v1922_v36 }
 0x15e   : > { %1726 = vmatprep.subr.bf16.mxu0 %v1923_v43  ;;  %1802 = vmatprep.subr.bf16.mxu1 %v1923_v43 }
 0x161   : > { %1727 = vmatpush3.bf16.msra.mxu0 %v1923_v43  ;;  %1810 = vmatpush3.bf16.msra.mxu1 %v1923_v43 }
 0x162   : > { %1728 = vmatprep.subr.bf16.mxu0 %v1924_v44  ;;  %1803 = vmatprep.subr.bf16.mxu1 %v1924_v44 }
 0x165   : > { %1729 = vmatpush3.bf16.msra.mxu0 %v1924_v44  ;;  %1811 = vmatpush3.bf16.msra.mxu1 %v1924_v44 }
 0x166   : > { %1730 = vmatprep.subr.bf16.mxu0 %v1925_v45  ;;  %1804 = vmatprep.subr.bf16.mxu1 %v1925_v45 }
 0x169   : > { %1731 = vmatpush3.bf16.msra.mxu0 %v1925_v45  ;;  %1812 = vmatpush3.bf16.msra.mxu1 %v1925_v45 }
 0x16a   : > { %1732 = vmatprep.subr.bf16.mxu0 %v1926_v46  ;;  %1805 = vmatprep.subr.bf16.mxu1 %v1926_v46 }
 0x16d   : > { %1733 = vmatpush3.bf16.msra.mxu0 %v1926_v46  ;;  %1813 = vmatpush3.bf16.msra.mxu1 %v1926_v46 }
 0x170   : > { %1735 = vmatmul.mubr.bf16.vlgmr.msra.gmra.mxu0 %v808_v55  ;;  %1743 = vmatmul.mubr.bf16.vlgmr.msra.gmra.mxu1 %v812_v56 }
 0x171   : > { %1738 = vmatprep.mubr.bf16.mxu0 %v809_v57  ;;  %1746 = vmatprep.mubr.bf16.mxu1 %v813_v58 }
 0x178   : > { %1739 = vmatmul.mubr.bf16.gmra.mxu0 %v810_v63  ;;  %1747 = vmatmul.mubr.bf16.gmra.mxu1 %v814_v0 }
 0x230   : > { %v1736_v2 = vpop.f32.mrf.mxu0  ;;  %v1744_v3 = vpop.f32.mrf.mxu1 }
 0x231   : > { %v929_v4 = vadd.f32 %v1736_v2, %v1492_v1  ;;  %v961_v5 = vadd.f32 %v1744_v3, %v1492_v1 }
 0x232   : > { %v920_v6 = vpop.f32.mrf.mxu0  ;;  %v952_v7 = vpop.f32.mrf.mxu1 }
 0x233   : > { %v921_v8 = vadd.f32 %v1492_v1, %v920_v6  ;;  %v953_v9 = vadd.f32 %v1492_v1, %v952_v7  ;;  %v985_v14 = vmax.f32 %v929_v4, 0.0  ;;  %v993_v15 = vmax.f32 %v961_v5, 0.0 }
 0x234   : > { %v1737_v10 = vpop.f32.mrf.mxu0  ;;  %v1745_v11 = vpop.f32.mrf.mxu1 }
 0x235   : > { %v932_v12 = vadd.f32 %v1737_v10, %v1492_v1  ;;  %v964_v13 = vadd.f32 %v1745_v11, %v1492_v1  ;;  %v983_v22 = vmax.f32 %v921_v8, 0.0  ;;  %v991_v23 = vmax.f32 %v953_v9, 0.0 }
 0x236   : > { %v923_v16 = vpop.f32.mrf.mxu0  ;;  %v955_v17 = vpop.f32.mrf.mxu1 }
 0x237   : > { %v986_v18 = vmax.f32 %v932_v12, 0.0  ;;  %v994_v19 = vmax.f32 %v964_v13, 0.0  ;;  %v924_v20 = vadd.f32 %v1492_v1, %v923_v16  ;;  %v956_v21 = vadd.f32 %v1492_v1, %v955_v17 }
 0x238   : > { %v1740_v24 = vpop.f32.mrf.mxu0  ;;  %v1748_v25 = vpop.f32.mrf.mxu1 }
 0x239   : > { %v1598_v26 = vpack.c.bf16 %v986_v18, %v985_v14  ;;  %v1618_v27 = vpack.c.bf16 %v994_v19, %v993_v15  ;;  %v984_v28 = vmax.f32 %v924_v20, 0.0  ;;  %v992_v29 = vmax.f32 %v956_v21, 0.0 }
 0x23a   : > { %v945_v30 = vadd.f32 %v1740_v24, %v1492_v1  ;;  %v977_v31 = vadd.f32 %v1748_v25, %v1492_v1  ;;  %v936_v32 = vpop.f32.mrf.mxu0  ;;  %v968_v33 = vpop.f32.mrf.mxu1 }
 0x23b   : > { %1631 = vst [vmem:[%s2260_s15 + $0x88] sm:$0xff] %v1598_v26   ;;  %1635 = vst [vmem:[%s2260_s15 + $0xa8] sm:$0xff] %v1618_v27   ;;  %v1593_v34 = vpack.c.bf16 %v984_v28, %v983_v22  ;;  %v1613_v35 = vpack.c.bf16 %v992_v29, %v991_v23  ;;  %v937_v36 = vadd.f32 %v1492_v1, %v936_v32 }
 0x23c   : > { %v969_v37 = vadd.f32 %v1492_v1, %v968_v33  ;;  %v1741_v38 = vpop.f32.mrf.mxu0  ;;  %v1749_v39 = vpop.f32.mrf.mxu1  ;;  %v989_v42 = vmax.f32 %v945_v30, 0.0  ;;  %v997_v43 = vmax.f32 %v977_v31, 0.0 }
 0x23d   : > { %1630 = vst [vmem:[%s2260_s15 + $0x80] sm:$0xff] %v1593_v34   ;;  %1634 = vst [vmem:[%s2260_s15 + $0xa0] sm:$0xff] %v1613_v35   ;;  %v948_v40 = vadd.f32 %v1741_v38, %v1492_v1  ;;  %v980_v41 = vadd.f32 %v1749_v39, %v1492_v1  ;;  %v987_v50 = vmax.f32 %v937_v36, 0.0 }
 0x23e   : > { %v939_v44 = vpop.f32.mrf.mxu0  ;;  %v971_v45 = vpop.f32.mrf.mxu1  ;;  %v995_v51 = vmax.f32 %v969_v37, 0.0 }
 0x23f   : > { %v990_v46 = vmax.f32 %v948_v40, 0.0  ;;  %v998_v47 = vmax.f32 %v980_v41, 0.0  ;;  %v940_v48 = vadd.f32 %v1492_v1, %v939_v44  ;;  %v972_v49 = vadd.f32 %v1492_v1, %v971_v45 }
 0x241   : > { %v1608_v52 = vpack.c.bf16 %v990_v46, %v989_v42  ;;  %v1628_v53 = vpack.c.bf16 %v998_v47, %v997_v43  ;;  %v988_v54 = vmax.f32 %v940_v48, 0.0  ;;  %v996_v55 = vmax.f32 %v972_v49, 0.0 }
 0x243   : > { %1633 = vst [vmem:[%s2260_s15 + $0x98] sm:$0xff] %v1608_v52   ;;  %1637 = vst [vmem:[%s2260_s15 + $0xb8] sm:$0xff] %v1628_v53   ;;  %v1603_v56 = vpack.c.bf16 %v988_v54, %v987_v50  ;;  %v1623_v57 = vpack.c.bf16 %v996_v55, %v995_v51 }
 0x245   : > { %1632 = vst [vmem:[%s2260_s15 + $0x90] sm:$0xff] %v1603_v56   ;;  %1636 = vst [vmem:[%s2260_s15 + $0xb0] sm:$0xff] %v1623_v57  }
 0x246 PF: > { %p1085_p8 = scmp.eq.s32.totalorder %s1997_s25, 1 }
 0x248   : > { %p1086_p9 = pnand %p1085_p8, %p787_p6 }
 0x249   : > { %s1535_s18 = sshll.u32 (!%p1086_p9), %s1993_s24, 6 }
 0x24a   : > { %1089 = sbr.rel (%p1086_p9) target bundleno = 834 (0x342), region = 101  ;;  %s2286_s1 = scalar_lea.vmem (!%p1086_p9), [#allocation3], %s1535_s18 }
 0x24f   : > { %v1927_v58 = vld [vmem:[%s2358_s4 + $0x38] sm:$0xff]   ;;  %v1928_v59 = vld [vmem:[%s2358_s4 + $0x30] sm:$0xff]   ;;  %v1929_v60 = vld [vmem:[%s2358_s4 + $0x28] sm:$0xff]  }
 0x250   : > { %1750 = vmatprep.subr.bf16.mxu0 %v1927_v58  ;;  %1814 = vmatprep.subr.bf16.mxu1 %v1927_v58  ;;  %v1930_v61 = vld [vmem:[%s2358_s4 + $0x20] sm:$0xff]   ;;  %v1931_v0 = vld [vmem:[%s2358_s4 + $0x18] sm:$0xff]   ;;  %v1932_v1 = vld [vmem:[%s2358_s4 + $0x10] sm:$0xff]  }
 0x251   : > { %1751 = vmatpush3.bf16.msra.mxu0 %v1927_v58  ;;  %1822 = vmatpush3.bf16.msra.mxu1 %v1927_v58  ;;  %v1935_v62 = vld [vmem:[%s2286_s1 + $0x100] sm:$0xff]   ;;  %v1933_v2 = vld [vmem:[%s2358_s4 + $0x8] sm:$0xff]   ;;  %v1939_v6 = vld [vmem:[%s2286_s1 + $0x110] sm:$0xff]  }
 0x252   : > { %1752 = vmatprep.subr.bf16.mxu0 %v1928_v59  ;;  %1815 = vmatprep.subr.bf16.mxu1 %v1928_v59  ;;  %v1936_v63 = vld [vmem:[%s2286_s1 + $0x120] sm:$0xff]   ;;  %v1937_v4 = vld [vmem:[%s2286_s1 + $0x108] sm:$0xff]   ;;  %v1940_v7 = vld [vmem:[%s2286_s1 + $0x130] sm:$0xff]  }
 0x253   : > { %1766 = vmatprep.mubr.bf16.mxu0 %v1935_v62  ;;  %1774 = vmatprep.mubr.bf16.mxu1 %v1936_v63  ;;  %v1934_v3 = vld [vmem:[%s2358_s4] sm:$0xff]   ;;  %v1938_v5 = vld [vmem:[%s2286_s1 + $0x128] sm:$0xff]   ;;  %v1941_v8 = vld [vmem:[%s2286_s1 + $0x118] sm:$0xff]  }
 0x254   : > { %v1942_v9 = vld [vmem:[%s2286_s1 + $0x138] sm:$0xff]   ;;  %v1552_v10 = vld [vmem:[%s2359_s5] ss:$0 sm:$0xff] }
 0x255   : > { %1753 = vmatpush3.bf16.msra.mxu0 %v1928_v59  ;;  %1823 = vmatpush3.bf16.msra.mxu1 %v1928_v59 }
 0x256   : > { %1754 = vmatprep.subr.bf16.mxu0 %v1929_v60  ;;  %1816 = vmatprep.subr.bf16.mxu1 %v1929_v60 }
 0x259   : > { %1755 = vmatpush3.bf16.msra.mxu0 %v1929_v60  ;;  %1824 = vmatpush3.bf16.msra.mxu1 %v1929_v60 }
 0x25a   : > { %1756 = vmatprep.subr.bf16.mxu0 %v1930_v61  ;;  %1817 = vmatprep.subr.bf16.mxu1 %v1930_v61 }
 0x25d   : > { %1757 = vmatpush3.bf16.msra.mxu0 %v1930_v61  ;;  %1825 = vmatpush3.bf16.msra.mxu1 %v1930_v61 }
 0x25e   : > { %1758 = vmatprep.subr.bf16.mxu0 %v1931_v0  ;;  %1818 = vmatprep.subr.bf16.mxu1 %v1931_v0 }
 0x261   : > { %1759 = vmatpush3.bf16.msra.mxu0 %v1931_v0  ;;  %1826 = vmatpush3.bf16.msra.mxu1 %v1931_v0 }
 0x262   : > { %1760 = vmatprep.subr.bf16.mxu0 %v1932_v1  ;;  %1819 = vmatprep.subr.bf16.mxu1 %v1932_v1 }
 0x265   : > { %1761 = vmatpush3.bf16.msra.mxu0 %v1932_v1  ;;  %1827 = vmatpush3.bf16.msra.mxu1 %v1932_v1 }
 0x266   : > { %1762 = vmatprep.subr.bf16.mxu0 %v1933_v2  ;;  %1820 = vmatprep.subr.bf16.mxu1 %v1933_v2 }
 0x269   : > { %1763 = vmatpush3.bf16.msra.mxu0 %v1933_v2  ;;  %1828 = vmatpush3.bf16.msra.mxu1 %v1933_v2 }
 0x26a   : > { %1764 = vmatprep.subr.bf16.mxu0 %v1934_v3  ;;  %1821 = vmatprep.subr.bf16.mxu1 %v1934_v3 }
 0x26d   : > { %1765 = vmatpush3.bf16.msra.mxu0 %v1934_v3  ;;  %1829 = vmatpush3.bf16.msra.mxu1 %v1934_v3 }
 0x270   : > { %1767 = vmatmul.mubr.bf16.vlgmr.msra.gmra.mxu0 %v1937_v4  ;;  %1775 = vmatmul.mubr.bf16.vlgmr.msra.gmra.mxu1 %v1938_v5 }
 0x271   : > { %1770 = vmatprep.mubr.bf16.mxu0 %v1939_v6  ;;  %1778 = vmatprep.mubr.bf16.mxu1 %v1940_v7 }
 0x278   : > { %1771 = vmatmul.mubr.bf16.gmra.mxu0 %v1941_v8  ;;  %1779 = vmatmul.mubr.bf16.gmra.mxu1 %v1942_v9 }
 0x330   : > { %v1768_v11 = vpop.f32.mrf.mxu0  ;;  %v1776_v12 = vpop.f32.mrf.mxu1 }
 0x331   : > { %v1272_v13 = vadd.f32 %v1768_v11, %v1552_v10  ;;  %v1304_v14 = vadd.f32 %v1776_v12, %v1552_v10 }
 0x332   : > { %v1263_v15 = vpop.f32.mrf.mxu0  ;;  %v1295_v16 = vpop.f32.mrf.mxu1 }
 0x333   : > { %1328 = vst [vmem:[%s2164_s8 + $0x10] sm:$0xff] %v1272_v13  ;;  %1336 = vst [vmem:[%s2164_s8 + $0x50] sm:$0xff] %v1304_v14  ;;  %v1264_v17 = vadd.f32 %v1552_v10, %v1263_v15  ;;  %v1296_v18 = vadd.f32 %v1552_v10, %v1295_v16 }
 0x334   : > { %v1769_v19 = vpop.f32.mrf.mxu0  ;;  %v1777_v20 = vpop.f32.mrf.mxu1 }
 0x335   : > { %1326 = vst [vmem:[%s2164_s8] sm:$0xff] %v1264_v17  ;;  %1334 = vst [vmem:[%s2164_s8 + $0x40] sm:$0xff] %v1296_v18  ;;  %v1275_v21 = vadd.f32 %v1769_v19, %v1552_v10  ;;  %v1307_v22 = vadd.f32 %v1777_v20, %v1552_v10 }
 0x336   : > { %v1266_v23 = vpop.f32.mrf.mxu0  ;;  %v1298_v24 = vpop.f32.mrf.mxu1 }
 0x337   : > { %1329 = vst [vmem:[%s2164_s8 + $0x18] sm:$0xff] %v1275_v21  ;;  %1337 = vst [vmem:[%s2164_s8 + $0x58] sm:$0xff] %v1307_v22  ;;  %v1267_v25 = vadd.f32 %v1552_v10, %v1266_v23  ;;  %v1299_v26 = vadd.f32 %v1552_v10, %v1298_v24 }
 0x338   : > { %v1772_v27 = vpop.f32.mrf.mxu0  ;;  %v1780_v28 = vpop.f32.mrf.mxu1 }
 0x339   : > { %1327 = vst [vmem:[%s2164_s8 + $0x8] sm:$0xff] %v1267_v25  ;;  %1335 = vst [vmem:[%s2164_s8 + $0x48] sm:$0xff] %v1299_v26  ;;  %v1288_v29 = vadd.f32 %v1772_v27, %v1552_v10  ;;  %v1320_v30 = vadd.f32 %v1780_v28, %v1552_v10 }
 0x33a   : > { %v1279_v31 = vpop.f32.mrf.mxu0  ;;  %v1311_v32 = vpop.f32.mrf.mxu1 }
 0x33b   : > { %1332 = vst [vmem:[%s2164_s8 + $0x30] sm:$0xff] %v1288_v29  ;;  %1340 = vst [vmem:[%s2164_s8 + $0x70] sm:$0xff] %v1320_v30  ;;  %v1280_v33 = vadd.f32 %v1552_v10, %v1279_v31  ;;  %v1312_v34 = vadd.f32 %v1552_v10, %v1311_v32 }
 0x33c   : > { %v1773_v35 = vpop.f32.mrf.mxu0  ;;  %v1781_v36 = vpop.f32.mrf.mxu1 }
 0x33d   : > { %1330 = vst [vmem:[%s2164_s8 + $0x20] sm:$0xff] %v1280_v33  ;;  %1338 = vst [vmem:[%s2164_s8 + $0x60] sm:$0xff] %v1312_v34  ;;  %v1291_v37 = vadd.f32 %v1773_v35, %v1552_v10  ;;  %v1323_v38 = vadd.f32 %v1781_v36, %v1552_v10 }
 0x33e   : > { %v1282_v39 = vpop.f32.mrf.mxu0  ;;  %v1314_v40 = vpop.f32.mrf.mxu1 }
 0x33f   : > { %1333 = vst [vmem:[%s2164_s8 + $0x38] sm:$0xff] %v1291_v37  ;;  %1341 = vst [vmem:[%s2164_s8 + $0x78] sm:$0xff] %v1323_v38  ;;  %v1283_v41 = vadd.f32 %v1552_v10, %v1282_v39  ;;  %v1315_v42 = vadd.f32 %v1552_v10, %v1314_v40 }
 0x341   : > { %1331 = vst [vmem:[%s2164_s8 + $0x28] sm:$0xff] %v1283_v41  ;;  %1339 = vst [vmem:[%s2164_s8 + $0x68] sm:$0xff] %v1315_v42 }
 0x342 PF: > { %s16_s29 = sadd.s32 1, %s2013_s29   ;;  %s2366_s17 = sld [smem:[#allocation5_spill]] }
 0x343   : > { %p13_p10 = scmp.ge.s32.totalorder %s16_s29, 10   ;;  %s2367_s18 = sld [smem:[#allocation6_spill]] }
 0x344   : > { %s2368_s21 = smov %s1985_s22  ;;  %s2369_s22 = smov %s2116_s13 }
 0x345   : > { %s2370_s23 = smov %s2001_s26  ;;  %s2371_s24 = smov %s2005_s27 }
 0x346   : > { %s2372_s25 = smov %s2009_s28  ;;  %s2373_s26 = smov %s2377_s30 }
 0x347   :  { %15 = sbr.rel (!%p13_p10) target bundleno = 7 (0x7), region = 146 }
 0x348   : > { %s2374_s27 = smov %s2366_s17 }
 0x349   : > { %s2375_s28 = smov %s2367_s18 }

</bundles_post_ra>
